<compile_context>
chip_gen: v6e
topology: v6e:2x2x1
jax: 0.10.0
libtpu: 0.0.40
codegen_flags: <defaults>
</compile_context>

<pallas_src>
import numpy as np
import jax
import jax.numpy as jnp
from jax.experimental import pallas as pl
from jax.experimental.pallas import tpu as pltpu

A_PAD = 128        # padded action dim (real: n_actions)
NEG_INF = -1e30    # bias on padded action lanes -> softmax prob exactly 0


def _round_up(x, m):
    return ((x + m - 1) // m) * m


# ---------------------------------------------------------------------------
# Pallas kernel: full actor MLP forward (4 matmuls + ReLU + softmax)
# ---------------------------------------------------------------------------
def actor_kernel(x_ref, w1_ref, b1_ref, w2_ref, b2_ref, w3_ref, b3_ref,
                 wh_ref, bh_ref, out_ref):
    x = x_ref[...]                                                  # (TB, 16) bf16

    h = jnp.dot(x, w1_ref[...], preferred_element_type=jnp.float32) + b1_ref[...]
    h = jnp.maximum(h, 0.0).astype(jnp.bfloat16)                    # relu(fc1)

    h = jnp.dot(h, w2_ref[...], preferred_element_type=jnp.float32) + b2_ref[...]
    h = jnp.maximum(h, 0.0).astype(jnp.bfloat16)                    # relu(fc2)

    h = jnp.dot(h, w3_ref[...], preferred_element_type=jnp.float32) + b3_ref[...]
    h = jnp.maximum(h, 0.0).astype(jnp.bfloat16)                    # relu(fc3)

    logits = jnp.dot(h, wh_ref[...], preferred_element_type=jnp.float32) + bh_ref[...]

    # Numerically stable softmax over the (padded) action dim; padded lanes
    # carry a -1e30 bias so exp underflows to exactly 0.  Exact divide in f32
    # (mem-bound kernel, divide is free; keeps PPO ratios unbiased), bf16 store.
    m = jnp.max(logits, axis=-1, keepdims=True)
    e = jnp.exp(logits - m)
    s = jnp.sum(e, axis=-1, keepdims=True)
    out_ref[...] = (e / s).astype(out_ref.dtype)
    # TODO(synk): on v5e, optionally fuse Gumbel-max sampling here
    # (pltpu.prng_seed / prng_random_bits) to emit int32 actions + log-probs
    # and cut the output stream to ~8 B/row.


# ---------------------------------------------------------------------------
# Wrapper: one batched pallas_call, weights resident in VMEM for all tiles
# ---------------------------------------------------------------------------
def actor_forward(x, params, *, n_actions, max_tile=1024, trim=True):
    """x: (B, d_in_pad) bf16 padded observations.

    Returns (B, n_actions) bf16 probs (trim=True) or the full (Bp, 128) slab
    whose padded action lanes are exactly 0 (trim=False, no slice pass).
    """
    w1, b1, w2, b2, w3, b3, wh, bh = params
    B, d_in = x.shape

    # Tile selection: as large as possible (per-step overhead amortization),
    # but >= 2 grid steps when B allows it so both v7x TensorCores get work.
    if B >= 32:
        Bp = _round_up(B, 32)
        tile = min(max_tile, Bp // 2)        # multiple of 16 (bf16 sublane pack)
        if Bp % tile:                        # only when Bp // 2 > max_tile
            Bp = _round_up(Bp, tile)
    else:
        Bp = B                               # single full-array block
        tile = Bp
    if Bp != B:                              # minimal pad (< one tile of rows)
        x = jnp.pad(x, ((0, Bp - B), (0, 0)))

    grid = (Bp // tile,)

    weight_bytes = sum(int(p.size) * p.dtype.itemsize for p in params)
    flops = 2 * Bp * (d_in * 128 + 128 * 128 + 128 * 128 + 128 * A_PAD)
    cost = pl.CostEstimate(
        flops=flops,
        transcendentals=Bp * A_PAD,
        bytes_accessed=Bp * d_in * 2 + Bp * A_PAD * 2 + weight_bytes,
    )

    vmem_full = pl.BlockSpec(memory_space=pltpu.MemorySpace.VMEM)   # whole array resident
    probs = pl.pallas_call(
        actor_kernel,
        out_shape=jax.ShapeDtypeStruct((Bp, A_PAD), jnp.bfloat16),
        grid=grid,
        in_specs=[pl.BlockSpec((tile, d_in), lambda i: (i, 0))] + [vmem_full] * 8,
        out_specs=pl.BlockSpec((tile, A_PAD), lambda i: (i, 0)),
        compiler_params=pltpu.CompilerParams(
            dimension_semantics=("parallel",)),
        cost_estimate=cost,
    )(x, w1, b1, w2, b2, w3, b3, wh, bh)

    if trim:
        return probs[:B, :n_actions]
    return probs


# ---------------------------------------------------------------------------
# Parameter construction (PyTorch-Linear-style uniform init) + padding + bf16
# ---------------------------------------------------------------------------
def init_linear(key, fan_in, fan_out):
    kw, kb = jax.random.split(key)
    bound = 1.0 / np.sqrt(fan_in)
    # stored as (in, out): equivalent to torch's (out, in) weight, transposed
    w = jax.random.uniform(kw, (fan_in, fan_out), jnp.float32, -bound, bound)
    b = jax.random.uniform(kb, (1, fan_out), jnp.float32, -bound, bound)
    return w, b


def build_params(input_size, hidden_size, n_actions, seed=0):
    keys = jax.random.split(jax.random.PRNGKey(seed), 4)
    w1, b1 = init_linear(keys[0], input_size, hidden_size)
    w2, b2 = init_linear(keys[1], hidden_size, hidden_size)
    w3, b3 = init_linear(keys[2], hidden_size, hidden_size)
    wh, bh = init_linear(keys[3], hidden_size, n_actions)

    # minimal input pad: 14 real features -> 16 (zero rows contribute nothing)
    d_in_pad = _round_up(input_size, 16)
    w1 = jnp.pad(w1, ((0, d_in_pad - input_size), (0, 0)))
    # action dim pad: zero weight cols, -1e30 bias -> exact softmax zeros
    wh = jnp.pad(wh, ((0, 0), (0, A_PAD - n_actions)))
    bh = jnp.pad(bh, ((0, 0), (0, A_PAD - n_actions)), constant_values=NEG_INF)

    # bf16 weights feed the MXU; biases stay f32 (added to the f32 accumulator)
    to_bf16 = lambda a: a.astype(jnp.bfloat16)
    return (to_bf16(w1), b1, to_bf16(w2), b2, to_bf16(w3), b3, to_bf16(wh), bh)


# ---------------------------------------------------------------------------
# Host-side glue mimicking the module's obs_dict flatten/concat + reward append
# ---------------------------------------------------------------------------
def flatten_obs(obs_dict, obs_keys, reward=None, pad_to=16):
    parts = []
    for key in obs_keys:
        if key in obs_dict:
            v = obs_dict[key]
            if isinstance(v, (np.ndarray, jnp.ndarray)):
                parts.append(jnp.asarray(v, jnp.float32).reshape(-1))
            else:
                parts.append(jnp.asarray([float(v)], jnp.float32))
    parts.append(jnp.asarray([0.0 if reward is None else float(reward)], jnp.float32))
    x = jnp.concatenate(parts)
    x = jnp.pad(x, (0, pad_to - x.shape[0]))
    return x.reshape(1, -1).astype(jnp.bfloat16)


# Pure-JAX reference (mirrors the kernel's bf16 casts; checks MXU path only)
def reference_forward(x_bf16, params, n_actions):
    w1, b1, w2, b2, w3, b3, wh, bh = params
    f32 = lambda a: a.astype(jnp.float32)
    h = jax.nn.relu(f32(x_bf16) @ f32(w1) + b1).astype(jnp.bfloat16)
    h = jax.nn.relu(f32(h) @ f32(w2) + b2).astype(jnp.bfloat16)
    h = jax.nn.relu(f32(h) @ f32(w3) + b3).astype(jnp.bfloat16)
    logits = f32(h) @ f32(wh) + bh
    return jax.nn.softmax(logits, axis=-1)[:, :n_actions]


if __name__ == "__main__":
    key = jax.random.PRNGKey(0)
    k_pos, k_inv, k_sta, k_rew = jax.random.split(key, 4)

    B = 256                 # -> Bp=256, tile=128, grid=(2,): both v7x TCs busy
    hidden_size = 128
    n_actions = 8

    # Synthetic obs_space: Box(4,), MultiBinary(8), Discrete -> 1 scalar,
    # plus 1 reward  => real input_size = 14 (zero-padded to 16 lanes only).
    pos = jax.random.normal(k_pos, (B, 4), jnp.float32)
    inv = (jax.random.uniform(k_inv, (B, 8)) > 0.5).astype(jnp.float32)
    status = jax.random.randint(k_sta, (B, 1), 0, 5).astype(jnp.float32)
    reward = jax.random.uniform(k_rew, (B, 1), jnp.float32)
    x_real = jnp.concatenate([pos, inv, status, reward], axis=-1)    # (B, 14)
    input_size = x_real.shape[1]

    d_in_pad = _round_up(input_size, 16)
    x = jnp.pad(x_real, ((0, 0), (0, d_in_pad - input_size))).astype(jnp.bfloat16)

    params = build_params(input_size, hidden_size, n_actions, seed=0)

    probs = actor_forward(x, params, n_actions=n_actions)
    probs = jax.block_until_ready(probs)

    ref = reference_forward(x, params, n_actions)
    np.testing.assert_allclose(np.asarray(probs.astype(jnp.float32)),
                               np.asarray(ref), rtol=2e-2, atol=3e-3)
    row_sums = np.asarray(jnp.sum(probs.astype(jnp.float32), axis=-1))
    assert np.all(np.abs(row_sums - 1.0) < 2e-2)

    # TODO(synk): torch.multinomial sampling in act() is host-side glue and is
    # left to the caller (jax.random.categorical on the returned probs slab).
    print("KERNEL_OK")
</pallas_src>

<mosaic_0001>
module attributes {stable_mosaic.version = 11 : i64} {
  func.func @actor_kernel(%arg0: i32, %arg1: memref<128x16xbf16, #tpu.memory_space<vmem>>, %arg2: memref<16x128xbf16, #tpu.memory_space<vmem>>, %arg3: memref<1x128xf32, #tpu.memory_space<vmem>>, %arg4: memref<128x128xbf16, #tpu.memory_space<vmem>>, %arg5: memref<1x128xf32, #tpu.memory_space<vmem>>, %arg6: memref<128x128xbf16, #tpu.memory_space<vmem>>, %arg7: memref<1x128xf32, #tpu.memory_space<vmem>>, %arg8: memref<128x128xbf16, #tpu.memory_space<vmem>>, %arg9: memref<1x128xf32, #tpu.memory_space<vmem>>, %arg10: memref<128x128xbf16, #tpu.memory_space<vmem>>) attributes {dimension_semantics = [#tpu.dimension_semantics<parallel>], iteration_bounds = array<i64: 2>, scalar_prefetch = 0 : i64, scratch_operands = 0 : i64, tpu.core_type = #tpu.core_type<tc>, window_params = [{transform_indices = @transform_0, window_bounds = array<i64: 128, 16>}, {pipeline_mode = #tpu.pipeline_mode<synchronous>, transform_indices = @transform_1, window_bounds = array<i64: 16, 128>}, {pipeline_mode = #tpu.pipeline_mode<synchronous>, transform_indices = @transform_2, window_bounds = array<i64: 1, 128>}, {pipeline_mode = #tpu.pipeline_mode<synchronous>, transform_indices = @transform_3, window_bounds = array<i64: 128, 128>}, {pipeline_mode = #tpu.pipeline_mode<synchronous>, transform_indices = @transform_4, window_bounds = array<i64: 1, 128>}, {pipeline_mode = #tpu.pipeline_mode<synchronous>, transform_indices = @transform_5, window_bounds = array<i64: 128, 128>}, {pipeline_mode = #tpu.pipeline_mode<synchronous>, transform_indices = @transform_6, window_bounds = array<i64: 1, 128>}, {pipeline_mode = #tpu.pipeline_mode<synchronous>, transform_indices = @transform_7, window_bounds = array<i64: 128, 128>}, {pipeline_mode = #tpu.pipeline_mode<synchronous>, transform_indices = @transform_8, window_bounds = array<i64: 1, 128>}, {transform_indices = @transform_9, window_bounds = array<i64: 128, 128>}]} {
    %c0 = arith.constant 0 : index
    %c0_0 = arith.constant 0 : index
    %0 = vector.load %arg1[%c0, %c0_0] : memref<128x16xbf16, #tpu.memory_space<vmem>>, vector<128x16xbf16>
    %c0_1 = arith.constant 0 : index
    %c0_2 = arith.constant 0 : index
    %1 = vector.load %arg2[%c0_1, %c0_2] : memref<16x128xbf16, #tpu.memory_space<vmem>>, vector<16x128xbf16>
    %cst = arith.constant dense<0.000000e+00> : vector<128x128xf32>
    %2 = tpu.matmul %0, %1, %cst {dimension_numbers = #tpu.dot_dimension_numbers<[1], [0], [0], [1], [0, 0, 1, 1], [], []>} : vector<128x16xbf16>, vector<16x128xbf16>, vector<128x128xf32> -> vector<128x128xf32>
    %c0_3 = arith.constant 0 : index
    %c0_4 = arith.constant 0 : index
    %3 = vector.load %arg3[%c0_3, %c0_4] : memref<1x128xf32, #tpu.memory_space<vmem>>, vector<1x128xf32>
    %4 = vector.broadcast %3 : vector<1x128xf32> to vector<128x128xf32>
    %5 = arith.addf %2, %4 : vector<128x128xf32>
    %cst_5 = arith.constant 0.000000e+00 : f32
    %6 = vector.broadcast %cst_5 : f32 to vector<128x128xf32>
    %7 = arith.maximumf %5, %6 : vector<128x128xf32>
    %8 = arith.truncf %7 : vector<128x128xf32> to vector<128x128xbf16>
    %c0_6 = arith.constant 0 : index
    %c0_7 = arith.constant 0 : index
    %9 = vector.load %arg4[%c0_6, %c0_7] : memref<128x128xbf16, #tpu.memory_space<vmem>>, vector<128x128xbf16>
    %cst_8 = arith.constant dense<0.000000e+00> : vector<128x128xf32>
    %10 = tpu.matmul %8, %9, %cst_8 {dimension_numbers = #tpu.dot_dimension_numbers<[1], [0], [0], [1], [0, 0, 1, 1], [], []>} : vector<128x128xbf16>, vector<128x128xbf16>, vector<128x128xf32> -> vector<128x128xf32>
    %c0_9 = arith.constant 0 : index
    %c0_10 = arith.constant 0 : index
    %11 = vector.load %arg5[%c0_9, %c0_10] : memref<1x128xf32, #tpu.memory_space<vmem>>, vector<1x128xf32>
    %12 = vector.broadcast %11 : vector<1x128xf32> to vector<128x128xf32>
    %13 = arith.addf %10, %12 : vector<128x128xf32>
    %cst_11 = arith.constant 0.000000e+00 : f32
    %14 = vector.broadcast %cst_11 : f32 to vector<128x128xf32>
    %15 = arith.maximumf %13, %14 : vector<128x128xf32>
    %16 = arith.truncf %15 : vector<128x128xf32> to vector<128x128xbf16>
    %c0_12 = arith.constant 0 : index
    %c0_13 = arith.constant 0 : index
    %17 = vector.load %arg6[%c0_12, %c0_13] : memref<128x128xbf16, #tpu.memory_space<vmem>>, vector<128x128xbf16>
    %cst_14 = arith.constant dense<0.000000e+00> : vector<128x128xf32>
    %18 = tpu.matmul %16, %17, %cst_14 {dimension_numbers = #tpu.dot_dimension_numbers<[1], [0], [0], [1], [0, 0, 1, 1], [], []>} : vector<128x128xbf16>, vector<128x128xbf16>, vector<128x128xf32> -> vector<128x128xf32>
    %c0_15 = arith.constant 0 : index
    %c0_16 = arith.constant 0 : index
    %19 = vector.load %arg7[%c0_15, %c0_16] : memref<1x128xf32, #tpu.memory_space<vmem>>, vector<1x128xf32>
    %20 = vector.broadcast %19 : vector<1x128xf32> to vector<128x128xf32>
    %21 = arith.addf %18, %20 : vector<128x128xf32>
    %cst_17 = arith.constant 0.000000e+00 : f32
    %22 = vector.broadcast %cst_17 : f32 to vector<128x128xf32>
    %23 = arith.maximumf %21, %22 : vector<128x128xf32>
    %24 = arith.truncf %23 : vector<128x128xf32> to vector<128x128xbf16>
    %c0_18 = arith.constant 0 : index
    %c0_19 = arith.constant 0 : index
    %25 = vector.load %arg8[%c0_18, %c0_19] : memref<128x128xbf16, #tpu.memory_space<vmem>>, vector<128x128xbf16>
    %cst_20 = arith.constant dense<0.000000e+00> : vector<128x128xf32>
    %26 = tpu.matmul %24, %25, %cst_20 {dimension_numbers = #tpu.dot_dimension_numbers<[1], [0], [0], [1], [0, 0, 1, 1], [], []>} : vector<128x128xbf16>, vector<128x128xbf16>, vector<128x128xf32> -> vector<128x128xf32>
    %c0_21 = arith.constant 0 : index
    %c0_22 = arith.constant 0 : index
    %27 = vector.load %arg9[%c0_21, %c0_22] : memref<1x128xf32, #tpu.memory_space<vmem>>, vector<1x128xf32>
    %28 = vector.broadcast %27 : vector<1x128xf32> to vector<128x128xf32>
    %29 = arith.addf %26, %28 : vector<128x128xf32>
    %cst_23 = arith.constant dense<0xFF800000> : vector<128xf32>
    %30 = vector.multi_reduction <maximumf>, %29, %cst_23 [1] : vector<128x128xf32> to vector<128xf32>
    %31 = vector.shape_cast %30 : vector<128xf32> to vector<128x1xf32>
    %32 = vector.broadcast %31 : vector<128x1xf32> to vector<128x128xf32>
    %33 = arith.subf %29, %32 : vector<128x128xf32>
    %34 = math.exp %33 : vector<128x128xf32>
    %cst_24 = arith.constant dense<0.000000e+00> : vector<128xf32>
    %35 = vector.multi_reduction <add>, %34, %cst_24 [1] : vector<128x128xf32> to vector<128xf32>
    %36 = vector.shape_cast %35 : vector<128xf32> to vector<128x1xf32>
    %37 = vector.broadcast %36 : vector<128x1xf32> to vector<128x128xf32>
    %38 = arith.divf %34, %37 : vector<128x128xf32>
    %39 = arith.truncf %38 : vector<128x128xf32> to vector<128x128xbf16>
    %c0_25 = arith.constant 0 : index
    %c0_26 = arith.constant 0 : index
    %40 = vector.load %arg10[%c0_25, %c0_26] : memref<128x128xbf16, #tpu.memory_space<vmem>>, vector<128x128xbf16>
    tpu.vector_store %arg10[%c0_25, %c0_26], %39 {strides = array<i32>} : memref<128x128xbf16, #tpu.memory_space<vmem>>, vector<128x128xbf16>,
    return
  }
  func.func @transform_0(%arg0: i32) -> (i32, i32) {
    %c0_i32 = arith.constant 0 : i32
    %c0_i32_0 = arith.constant 0 : i32
    return %arg0, %c0_i32 : i32, i32
  }
  func.func @transform_1(%arg0: i32) -> (i32, i32) {
    %c0_i32 = arith.constant 0 : i32
    %c0_i32_0 = arith.constant 0 : i32
    %c0_i32_1 = arith.constant 0 : i32
    return %c0_i32, %c0_i32_0 : i32, i32
  }
  func.func @transform_2(%arg0: i32) -> (i32, i32) {
    %c0_i32 = arith.constant 0 : i32
    %c0_i32_0 = arith.constant 0 : i32
    %c0_i32_1 = arith.constant 0 : i32
    return %c0_i32, %c0_i32_0 : i32, i32
  }
  func.func @transform_3(%arg0: i32) -> (i32, i32) {
    %c0_i32 = arith.constant 0 : i32
    %c0_i32_0 = arith.constant 0 : i32
    %c0_i32_1 = arith.constant 0 : i32
    return %c0_i32, %c0_i32_0 : i32, i32
  }
  func.func @transform_4(%arg0: i32) -> (i32, i32) {
    %c0_i32 = arith.constant 0 : i32
    %c0_i32_0 = arith.constant 0 : i32
    %c0_i32_1 = arith.constant 0 : i32
    return %c0_i32, %c0_i32_0 : i32, i32
  }
  func.func @transform_5(%arg0: i32) -> (i32, i32) {
    %c0_i32 = arith.constant 0 : i32
    %c0_i32_0 = arith.constant 0 : i32
    %c0_i32_1 = arith.constant 0 : i32
    return %c0_i32, %c0_i32_0 : i32, i32
  }
  func.func @transform_6(%arg0: i32) -> (i32, i32) {
    %c0_i32 = arith.constant 0 : i32
    %c0_i32_0 = arith.constant 0 : i32
    %c0_i32_1 = arith.constant 0 : i32
    return %c0_i32, %c0_i32_0 : i32, i32
  }
  func.func @transform_7(%arg0: i32) -> (i32, i32) {
    %c0_i32 = arith.constant 0 : i32
    %c0_i32_0 = arith.constant 0 : i32
    %c0_i32_1 = arith.constant 0 : i32
    return %c0_i32, %c0_i32_0 : i32, i32
  }
  func.func @transform_8(%arg0: i32) -> (i32, i32) {
    %c0_i32 = arith.constant 0 : i32
    %c0_i32_0 = arith.constant 0 : i32
    %c0_i32_1 = arith.constant 0 : i32
    return %c0_i32, %c0_i32_0 : i32, i32
  }
  func.func @transform_9(%arg0: i32) -> (i32, i32) {
    %c0_i32 = arith.constant 0 : i32
    %c0_i32_0 = arith.constant 0 : i32
    return %arg0, %c0_i32 : i32, i32
  }
}

</mosaic_0001>

<bundles_post_ra>
// kernel: tpu_custom_call.1
= control target key start
LH: loop header
LB: loop body
LE: loop exit
PB: predicated region body
PF: predicated region fallthrough
CT: control target
= control target key end

     0   :  { %14 = vsyncpa [#allocation3], 0  ;;  %s2369_s0 = inlined_call_operand.vmem [shape: bf16[256,16], index: 0, kind: input, shape index: {}]   ;;  %s2370_s1 = inlined_call_operand.vmem [shape: bf16[16,128], index: 1, kind: input, shape index: {}]   ;;  %s2371_s2 = inlined_call_operand.vmem [shape: f32[1,128], index: 2, kind: input, shape index: {}]   ;;  %s2372_s3 = inlined_call_operand.vmem [shape: bf16[128,128], index: 3, kind: input, shape index: {}]   ;;  %s2373_s4 = inlined_call_operand.vmem [shape: f32[1,128], index: 4, kind: input, shape index: {}]   ;;  %s2374_s5 = inlined_call_operand.vmem [shape: bf16[128,128], index: 5, kind: input, shape index: {}]   ;;  %s2375_s6 = inlined_call_operand.vmem [shape: f32[1,128], index: 6, kind: input, shape index: {}]   ;;  %s2376_s7 = inlined_call_operand.hbm [shape: bf16[128,128], index: 7, kind: input, shape index: {}]   ;;  %s2377_s8 = inlined_call_operand.vmem [shape: f32[1,128], index: 8, kind: input, shape index: {}]   ;;  %s2378_s9 = inlined_call_operand.hbm [shape: bf16[256,128], index: 9, kind: output, shape index: {}]  }
   0x1   :  { %15 = vsyncpa [#allocation4], 0 }
   0x2   :  { %17 = vsyncpa [#allocation4 + $0x1], 0  ;;  %s2056_s30 = smov 0   ;;  %s2058_s10 = smov 0  }
   0x3   :  { %s2060_s11 = smov 0   ;;  %s2062_s12 = smov 0  }
   0x4 LB: > { %s2077_s13 = sadd.s32 4294967295, %s1998_s12   ;;  %s1431_s14 = sadd.s32 4294967294, %s1998_s12   ;;  %s1998_s12 = sphi %s2062_s12, %s2386_s12   ;;  %s1994_s11 = sphi %s2060_s11, %s2385_s11   ;;  %s1990_s10 = sphi %s2058_s10, %s2384_s10   ;;  %s1986_s30 = sphi %s2056_s30, %s2383_s30  }
   0x5   : > { %s2081_s15 = sadd.s32 1, %s1998_s12   ;;  %s224_s16 = sadd.s32 1, %s1994_s11 }
   0x6   : > { %s221_s17 = ssub.s32 %s1998_s12, %s2081_s15  ;;  %p234_p0 = scmp.ne.s32.totalorder %s1994_s11, %s1990_s10 }
   0x7   : > { %p222_p1 = scmp.eq.s32.totalorder %s221_s17, 0  ;;  %p235_p2 = scmp.eq.s32.totalorder %s2077_s13, 1 }
   0x8   : > { %p240_p3 = scmp.ne.s32.totalorder %s1990_s10, %s1986_s30  ;;  %p241_p4 = scmp.eq.s32.totalorder %s1431_s14, 1 }
   0x9   : > { %s2092_s18 = scalar_select %p222_p1, %s1994_s11, %s224_s16  }
   0xa   : > { %p2094_p5 = por %p235_p2, %p234_p0  ;;  %p2098_p6 = por %p241_p4, %p240_p3 }
   0xb   : > { %p1432_p7 = scmp.ge.s32.totalorder %s1998_s12, 1  ;;  %p248_p8 = scmp.lt.s32.totalorder %s1998_s12, 3 }
   0xc   : > { %s2380_s20 = scalar_select %p2098_p6, 1, 0 }
   0xd   : > { %p1771_p9 = scmp.eq.s32.totalorder %s2077_s13, 0  ;;  %p2105_p10 = pnand %p1432_p7, %p248_p8 }
   0xe   : > { %s2000_s22 = smov [#allocation2]  }
   0xf   : > { %s278_s23 = sshll.u32 %s2000_s22, 4  ;;  %p1763_p11 = pneg %p2105_p10  ;;  %s279_s23 = int_to_ptr.vmem [resolvable:$true] %s278_s23 }
  0x10   : > { %s1919_s24 = scalar_lea.vmem %s279_s23, 1024  ;;  %p1927_p3 = scmp.lt.s32.totalorder %s279_s23, %s279_s23 }
  0x11   : > { %p1764_p12 = pnand %p1771_p9, %p1763_p11  ;;  %p1920_p0 = scmp.ne.s32.totalorder %s279_s23, %s1919_s24 }
  0x12   : > { %p1928_p4 = scmp.lt.s32.totalorder %s1919_s24, %s1919_s24 }
  0x13   : > { %p1910_p13 = pneg %p1764_p12 }
  0x14   : > { %p1929_p6 = por %p1928_p4, %p1927_p3 }
  0x15   : > { %p1922_p1 = pnand %p1920_p0, %p1910_p13 }
  0x17   : > { %p1923_p2 = pneg %p1922_p1 }
  0x19   : > { %p1930_p7 = pnand %p1929_p6, %p1923_p2 }
  0x1b   : > { %1933 = shalt.err (!%p1930_p7)
}
  0x1c   : > { %s2001_s25 = smov 64   ;;  %s2002_s26 = smov 4  }
  0x1d   : > { %1766 = dma.hbm_to_vmem [thread:$0]  (!%p1764_p12), %s2376_s7, 1024, %s279_s23, [#allocation3], %s2001_s25, %s2001_s25, %s2002_s26  }
  0x1e   : > { %306 = sbr.rel (%p2105_p10) target bundleno = 1217 (0x4c1), region = 56 }
  0x23   : > { %1977 = dma.done.wait (%p1771_p9), [#allocation3], 1024  }
  0x24   : > { %1979 = vsyncadd (%p1771_p9), [#allocation3], 4294966272  ;;  %s1438_s29 = sshll.u32 %s2077_s13, 4  ;;  %v1811_v0 = vld [vmem:[%s2370_s1] sm:$0xff]   ;;  %vm421_vm0 = vcmask 130048   ;;  %v1820_v5 = vld [vmem:[%s2372_s3 + $0x38] sm:$0xff]  }
  0x25   : > { %p343_p8 = scmp.lt.s32.totalorder %s1438_s29, 31  ;;  %1627 = vmatprep.subr.bf16.mxu0 %v1811_v0  ;;  %v1821_v6 = vld [vmem:[%s2372_s3 + $0x30] sm:$0xff]   ;;  %1645 = vmatprep.subr.bf16.mxu1 %v1820_v5  ;;  %v1822_v8 = vld [vmem:[%s2372_s3 + $0x28] sm:$0xff]   ;;  %v1823_v9 = vld [vmem:[%s2372_s3 + $0x20] sm:$0xff]   ;;  %s1522_s16 = sshll.u32 %s2077_s13, 10 }
  0x26   : > { %1628 = vmatpush3.bf16.msra.mxu0 %v1811_v0  ;;  %1646 = vmatpush3.bf16.msra.mxu1 %v1820_v5  ;;  %v1824_v12 = vld [vmem:[%s2372_s3 + $0x18] sm:$0xff]   ;;  %v1825_v14 = vld [vmem:[%s2372_s3 + $0x10] sm:$0xff]   ;;  %v1826_v15 = vld [vmem:[%s2372_s3 + $0x8] sm:$0xff]   ;;  %s2322_s21 = scalar_lea.hbm %s2378_s9, %s1522_s16  ;;  %s2003_s26 = smov [#allocation5]  }
  0x27   : > { %s2388_s29 = smov (!%p343_p8, %s1438_s29), 31  ;;  %1647 = vmatprep.subr.bf16.mxu1 %v1821_v6  ;;  %v1827_v16 = vld [vmem:[%s2372_s3] sm:$0xff]   ;;  %v1828_v17 = vld [vmem:[%s2374_s5 + $0x38] sm:$0xff]   ;;  %v1829_v18 = vld [vmem:[%s2374_s5 + $0x30] sm:$0xff]   ;;  %s1938_s27 = sshll.u32 %s2003_s26, 4  ;;  %s1939_s27 = int_to_ptr.vmem [resolvable:$false] %s1938_s27 }
  0x28   : > { %s1439_s14 = sshll.u32 %s2388_s29, 2  ;;  %1677 = vmatprep.subr.bf16.mxu0 %v1828_v17  ;;  %v1830_v19 = vld [vmem:[%s2374_s5 + $0x28] sm:$0xff]   ;;  %v1831_v20 = vld [vmem:[%s2374_s5 + $0x20] sm:$0xff]   ;;  %v1832_v21 = vld [vmem:[%s2374_s5 + $0x18] sm:$0xff]   ;;  %s1940_s28 = scalar_lea.vmem %s1939_s27, 2048 }
  0x29   : > { %s2126_s22 = scalar_lea.vmem %s2369_s0, %s1439_s14  ;;  %v1440_v24 = vld [vmem:[%s2371_s2] ss:$0 sm:$0xff] }
  0x2a   : > { %v1812_v1 = vld [vmem:[%s2126_s22] sm:$0xff]   ;;  %v1813_v2 = vld [vmem:[%s2126_s22 + $0x8] sm:$0xff]   ;;  %v1814_v3 = vld [vmem:[%s2126_s22 + $0x10] sm:$0xff]   ;;  %1648 = vmatpush3.bf16.msra.mxu1 %v1821_v6 }
  0x2b   : > { %1629 = vmatprep.mubr.msk.bf16.mxu0 %vm421_vm0, %v1812_v1  ;;  %v1815_v4 = vld [vmem:[%s2126_s22 + $0x18] sm:$0xff]   ;;  %v1816_v7 = vld [vmem:[%s2126_s22 + $0x20] sm:$0xff]   ;;  %v1817_v10 = vld [vmem:[%s2126_s22 + $0x28] sm:$0xff]   ;;  %1649 = vmatprep.subr.bf16.mxu1 %v1822_v8 }
  0x2c   : > { %1630 = vmatmul.mubr.msk.bf16.vlgmr.msra.gmra.mxu0 %vm421_vm0, %v1813_v2  ;;  %v1818_v11 = vld [vmem:[%s2126_s22 + $0x30] sm:$0xff]   ;;  %v1819_v13 = vld [vmem:[%s2126_s22 + $0x38] sm:$0xff]   ;;  %s339_s22 = sand.u32 1, %s1990_s10  }
  0x2d   : > { %1633 = vmatprep.mubr.msk.bf16.mxu0 %vm421_vm0, %v1814_v3  ;;  %1678 = vmatpush3.bf16.msra.mxu0 %v1828_v17  ;;  %v1835_v17 = vld [vmem:[%s2374_s5] sm:$0xff]   ;;  %s1437_s29 = sshll.u32 %s339_s22, 6  ;;  %s2329_s13 = scalar_lea.sflag [#allocation4], %s339_s22 }
  0x2e   : > { %1650 = vmatpush3.bf16.msra.mxu1 %v1822_v8  ;;  %1679 = vmatprep.subr.bf16.mxu0 %v1829_v18  ;;  %s2294_s14 = scalar_lea.vmem [#allocation5], %s1437_s29 }
  0x2f   : > { %1651 = vmatprep.subr.bf16.mxu1 %v1823_v9  ;;  %s1357_s17 = sshll.u32 %s2294_s14, 4  ;;  %s2324_s17 = int_to_ptr.vmem [resolvable:$true] %s1357_s17 }
  0x30   : > { %s1934_s25 = scalar_lea.vmem %s2324_s17, 1024  ;;  %p1941_p11 = scmp.lt.s32.totalorder %s2324_s17, %s1939_s27 }
  0x31   : > { %1680 = vmatpush3.bf16.msra.mxu0 %v1829_v18  ;;  %v1836_v18 = vld [vmem:[#allocation2 + $0x38] sm:$0xff]   ;;  %p1935_p6 = scmp.ne.s32.totalorder %s2324_s17, %s1934_s25  ;;  %p1942_p12 = scmp.lt.s32.totalorder %s1940_s28, %s1934_s25 }
  0x32   : > { %1652 = vmatpush3.bf16.msra.mxu1 %v1823_v9  ;;  %1681 = vmatprep.subr.bf16.mxu0 %v1830_v19 }
  0x33   : > { %1653 = vmatprep.subr.bf16.mxu1 %v1824_v12  ;;  %p1936_p9 = pnand %p1935_p6, %p2094_p5  ;;  %p1943_p13 = por %p1942_p12, %p1941_p11 }
  0x34   : > { %1634 = vmatmul.mubr.msk.bf16.gmra.mxu0 %vm421_vm0, %v1815_v4 }
  0x35   : > { %1637 = vmatprep.mubr.msk.bf16.mxu0 %vm421_vm0, %v1816_v7  ;;  %1682 = vmatpush3.bf16.msra.mxu0 %v1830_v19  ;;  %v1837_v19 = vld [vmem:[#allocation2 + $0x30] sm:$0xff]   ;;  %p1937_p10 = pneg %p1936_p9 }
  0x36   : > { %1654 = vmatpush3.bf16.msra.mxu1 %v1824_v12  ;;  %1683 = vmatprep.subr.bf16.mxu0 %v1831_v20 }
  0x37   : > { %1655 = vmatprep.subr.bf16.mxu1 %v1825_v14  ;;  %p1944_p0 = pnand %p1943_p13, %p1937_p10 }
  0x39   : > { %1684 = vmatpush3.bf16.msra.mxu0 %v1831_v20  ;;  %v1838_v20 = vld [vmem:[#allocation2 + $0x28] sm:$0xff]  }
  0x3a   : > { %1656 = vmatpush3.bf16.msra.mxu1 %v1825_v14  ;;  %1685 = vmatprep.subr.bf16.mxu0 %v1832_v21 }
  0x3b   : > { %1657 = vmatprep.subr.bf16.mxu1 %v1826_v15 }
  0x3c   : > { %1638 = vmatmul.mubr.msk.bf16.gmra.mxu0 %vm421_vm0, %v1817_v10 }
  0x3d   : > { %1641 = vmatprep.mubr.msk.bf16.mxu0 %vm421_vm0, %v1818_v11  ;;  %1686 = vmatpush3.bf16.msra.mxu0 %v1832_v21  ;;  %v1839_v21 = vld [vmem:[#allocation2 + $0x20] sm:$0xff]  }
  0x3e   : > { %1658 = vmatpush3.bf16.msra.mxu1 %v1826_v15  ;;  %v1833_v15 = vld [vmem:[%s2374_s5 + $0x10] sm:$0xff]  }
  0x3f   : > { %1659 = vmatprep.subr.bf16.mxu1 %v1827_v16  ;;  %1687 = vmatprep.subr.bf16.mxu0 %v1833_v15 }
  0x41   : > { %1688 = vmatpush3.bf16.msra.mxu0 %v1833_v15 }
  0x42   : > { %1660 = vmatpush3.bf16.msra.mxu1 %v1827_v16  ;;  %v1834_v16 = vld [vmem:[%s2374_s5 + $0x8] sm:$0xff]  }
  0x43   : > { %1689 = vmatprep.subr.bf16.mxu0 %v1834_v16  ;;  %1741 = vmatprep.subr.bf16.mxu1 %v1836_v18 }
  0x44   : > { %1642 = vmatmul.mubr.msk.bf16.gmra.mxu0 %vm421_vm0, %v1819_v13 }
  0x45   : > { %1690 = vmatpush3.bf16.msra.mxu0 %v1834_v16  ;;  %v1841_v16 = vld [vmem:[#allocation2 + $0x10] sm:$0xff]  }
  0x46   : > { %1691 = vmatprep.subr.bf16.mxu0 %v1835_v17 }
  0x49   : > { %1692 = vmatpush3.bf16.msra.mxu0 %v1835_v17  ;;  %v1842_v17 = vld [vmem:[#allocation2 + $0x8] sm:$0xff]  }
  0x4a   : > { %1709 = vmatprep.subr.bf16.mxu0 %v1836_v18 }
  0xec   : > { %v1631_v22 = vpop.f32.mrf.mxu0 }
  0xed   : > { %v489_v28 = vadd.f32 %v1631_v22, %v1440_v24  ;;  %v2198_v22 = vld [vmem:[#allocation2 + $0x18] sm:$0xff]  }
  0xee   : > { %v480_v23 = vpop.f32.mrf.mxu0 }
  0xef   : > { %v481_v26 = vadd.f32 %v1440_v24, %v480_v23  ;;  %v545_v35 = vmax.f32 %v489_v28, 0.0 }
  0xf0   : > { %v1632_v25 = vpop.f32.mrf.mxu0 }
  0xf1   : > { %v492_v27 = vadd.f32 %v1632_v25, %v1440_v24  ;;  %v543_v33 = vmax.f32 %v481_v26, 0.0  ;;  %v1458_v25 = vld [vmem:[%s2373_s4] ss:$0 sm:$0xff] }
  0xf2   : > { %v483_v29 = vpop.f32.mrf.mxu0 }
  0xf3   : > { %v484_v30 = vadd.f32 %v1440_v24, %v483_v29  ;;  %v546_v31 = vmax.f32 %v492_v27, 0.0 }
  0xf4   : > { %v1635_v32 = vpop.f32.mrf.mxu0 }
  0xf5   : > { %v544_v34 = vmax.f32 %v484_v30, 0.0  ;;  %v560_v38 = vpack.c.bf16 %v546_v31, %v545_v35  ;;  %v505_v42 = vadd.f32 %v1635_v32, %v1440_v24 }
  0xf6   : > { %v496_v36 = vpop.f32.mrf.mxu0 }
  0xf7   : > { %v559_v37 = vpack.c.bf16 %v544_v34, %v543_v33  ;;  %v497_v40 = vadd.f32 %v1440_v24, %v496_v36  ;;  %v549_v49 = vmax.f32 %v505_v42, 0.0 }
  0xf8   : > { %v1636_v39 = vpop.f32.mrf.mxu0 }
  0xf9   : > { %v508_v41 = vadd.f32 %v1636_v39, %v1440_v24  ;;  %1661 = vmatprep.mubr.bf16.mxu1 %v559_v37  ;;  %v547_v47 = vmax.f32 %v497_v40, 0.0 }
  0xfa   : > { %v499_v43 = vpop.f32.mrf.mxu0  ;;  %1662 = vmatmul.mubr.bf16.vlgmr.msra.gmra.mxu1 %v560_v38 }
  0xfb   : > { %v500_v44 = vadd.f32 %v1440_v24, %v499_v43  ;;  %v550_v45 = vmax.f32 %v508_v41, 0.0  ;;  %1749 = vmatpush3.bf16.msra.mxu1 %v1836_v18 }
  0xfc   : > { %v1639_v46 = vpop.f32.mrf.mxu0  ;;  %1742 = vmatprep.subr.bf16.mxu1 %v1837_v19 }
  0xfd   : > { %v548_v48 = vmax.f32 %v500_v44, 0.0  ;;  %v562_v52 = vpack.c.bf16 %v550_v45, %v549_v49  ;;  %v521_v56 = vadd.f32 %v1639_v46, %v1440_v24 }
  0xfe   : > { %v512_v50 = vpop.f32.mrf.mxu0 }
  0xff   : > { %v561_v51 = vpack.c.bf16 %v548_v48, %v547_v47  ;;  %v513_v54 = vadd.f32 %v1440_v24, %v512_v50  ;;  %v553_v63 = vmax.f32 %v521_v56, 0.0  ;;  %1750 = vmatpush3.bf16.msra.mxu1 %v1837_v19 }
 0x100   : > { %v1640_v53 = vpop.f32.mrf.mxu0  ;;  %1743 = vmatprep.subr.bf16.mxu1 %v1838_v20 }
 0x101   : > { %v524_v55 = vadd.f32 %v1640_v53, %v1440_v24  ;;  %1665 = vmatprep.mubr.bf16.mxu1 %v561_v51  ;;  %v551_v61 = vmax.f32 %v513_v54, 0.0 }
 0x102   : > { %v515_v57 = vpop.f32.mrf.mxu0  ;;  %1666 = vmatmul.mubr.bf16.gmra.mxu1 %v562_v52 }
 0x103   : > { %v516_v58 = vadd.f32 %v1440_v24, %v515_v57  ;;  %v554_v59 = vmax.f32 %v524_v55, 0.0  ;;  %1751 = vmatpush3.bf16.msra.mxu1 %v1838_v20 }
 0x104   : > { %v1643_v60 = vpop.f32.mrf.mxu0  ;;  %1744 = vmatprep.subr.bf16.mxu1 %v1839_v21 }
 0x105   : > { %v552_v62 = vmax.f32 %v516_v58, 0.0  ;;  %v564_v2 = vpack.c.bf16 %v554_v59, %v553_v63  ;;  %v537_v6 = vadd.f32 %v1643_v60, %v1440_v24 }
 0x106   : > { %v528_v0 = vpop.f32.mrf.mxu0 }
 0x107   : > { %v563_v1 = vpack.c.bf16 %v552_v62, %v551_v61  ;;  %v529_v4 = vadd.f32 %v1440_v24, %v528_v0  ;;  %v557_v12 = vmax.f32 %v537_v6, 0.0  ;;  %1752 = vmatpush3.bf16.msra.mxu1 %v1839_v21 }
 0x108   : > { %v1644_v3 = vpop.f32.mrf.mxu0  ;;  %1745 = vmatprep.subr.bf16.mxu1 %v2198_v22 }
 0x109   : > { %v540_v5 = vadd.f32 %v1644_v3, %v1440_v24  ;;  %1669 = vmatprep.mubr.bf16.mxu1 %v563_v1  ;;  %v555_v10 = vmax.f32 %v529_v4, 0.0 }
 0x10a   : > { %v531_v7 = vpop.f32.mrf.mxu0  ;;  %1670 = vmatmul.mubr.bf16.gmra.mxu1 %v564_v2 }
 0x10b   : > { %v532_v8 = vadd.f32 %v1440_v24, %v531_v7  ;;  %v558_v9 = vmax.f32 %v540_v5, 0.0  ;;  %1753 = vmatpush3.bf16.msra.mxu1 %v2198_v22 }
 0x10c   : > { %1746 = vmatprep.subr.bf16.mxu1 %v1841_v16 }
 0x10d   : > { %v556_v11 = vmax.f32 %v532_v8, 0.0  ;;  %v566_v14 = vpack.c.bf16 %v558_v9, %v557_v12 }
 0x10f   : > { %v565_v13 = vpack.c.bf16 %v556_v11, %v555_v10  ;;  %1754 = vmatpush3.bf16.msra.mxu1 %v1841_v16 }
 0x110   : > { %1747 = vmatprep.subr.bf16.mxu1 %v1842_v17 }
 0x111   : > { %1673 = vmatprep.mubr.bf16.mxu1 %v565_v13 }
 0x112   : > { %1674 = vmatmul.mubr.bf16.gmra.mxu1 %v566_v14 }
 0x113   : > { %1755 = vmatpush3.bf16.msra.mxu1 %v1842_v17 }
 0x1ba   : > { %v1663_v23 = vpop.f32.mrf.mxu1 }
 0x1bb   : > { %v681_v29 = vadd.f32 %v1663_v23, %v1458_v25 }
 0x1bc   : > { %v672_v24 = vpop.f32.mrf.mxu1 }
 0x1bd   : > { %v673_v27 = vadd.f32 %v1458_v25, %v672_v24  ;;  %v737_v36 = vmax.f32 %v681_v29, 0.0 }
 0x1be   : > { %v1664_v26 = vpop.f32.mrf.mxu1 }
 0x1bf   : > { %v684_v28 = vadd.f32 %v1664_v26, %v1458_v25  ;;  %v735_v34 = vmax.f32 %v673_v27, 0.0 }
 0x1c0   : > { %v675_v30 = vpop.f32.mrf.mxu1 }
 0x1c1   : > { %v676_v31 = vadd.f32 %v1458_v25, %v675_v30  ;;  %v738_v32 = vmax.f32 %v684_v28, 0.0 }
 0x1c2   : > { %v1667_v33 = vpop.f32.mrf.mxu1 }
 0x1c3   : > { %v736_v35 = vmax.f32 %v676_v31, 0.0  ;;  %v752_v39 = vpack.c.bf16 %v738_v32, %v737_v36  ;;  %v697_v43 = vadd.f32 %v1667_v33, %v1458_v25 }
 0x1c4   : > { %v688_v37 = vpop.f32.mrf.mxu1 }
 0x1c5   : > { %v751_v38 = vpack.c.bf16 %v736_v35, %v735_v34  ;;  %v689_v41 = vadd.f32 %v1458_v25, %v688_v37  ;;  %v741_v50 = vmax.f32 %v697_v43, 0.0 }
 0x1c6   : > { %v1668_v40 = vpop.f32.mrf.mxu1 }
 0x1c7   : > { %v700_v42 = vadd.f32 %v1668_v40, %v1458_v25  ;;  %1693 = vmatprep.mubr.bf16.mxu0 %v751_v38  ;;  %v739_v48 = vmax.f32 %v689_v41, 0.0 }
 0x1c8   : > { %v691_v44 = vpop.f32.mrf.mxu1  ;;  %1694 = vmatmul.mubr.bf16.vlgmr.msra.gmra.mxu0 %v752_v39 }
 0x1c9   : > { %v692_v45 = vadd.f32 %v1458_v25, %v691_v44  ;;  %1710 = vmatpush3.bf16.msra.mxu0 %v1836_v18  ;;  %v742_v46 = vmax.f32 %v700_v42, 0.0  ;;  %v1843_v18 = vld [vmem:[#allocation2] sm:$0xff]  }
 0x1ca   : > { %v1671_v47 = vpop.f32.mrf.mxu1  ;;  %1711 = vmatprep.subr.bf16.mxu0 %v1837_v19  ;;  %1748 = vmatprep.subr.bf16.mxu1 %v1843_v18 }
 0x1cb   : > { %v740_v49 = vmax.f32 %v692_v45, 0.0  ;;  %v754_v53 = vpack.c.bf16 %v742_v46, %v741_v50  ;;  %v713_v57 = vadd.f32 %v1671_v47, %v1458_v25  ;;  %1756 = vmatpush3.bf16.msra.mxu1 %v1843_v18 }
 0x1cc   : > { %v704_v51 = vpop.f32.mrf.mxu1 }
 0x1cd   : > { %v753_v52 = vpack.c.bf16 %v740_v49, %v739_v48  ;;  %1712 = vmatpush3.bf16.msra.mxu0 %v1837_v19  ;;  %v705_v55 = vadd.f32 %v1458_v25, %v704_v51  ;;  %v745_v0 = vmax.f32 %v713_v57, 0.0 }
 0x1ce   : > { %v1672_v54 = vpop.f32.mrf.mxu1  ;;  %1713 = vmatprep.subr.bf16.mxu0 %v1838_v20 }
 0x1cf   : > { %v716_v56 = vadd.f32 %v1672_v54, %v1458_v25  ;;  %1697 = vmatprep.mubr.bf16.mxu0 %v753_v52  ;;  %v743_v62 = vmax.f32 %v705_v55, 0.0 }
 0x1d0   : > { %v707_v58 = vpop.f32.mrf.mxu1  ;;  %1698 = vmatmul.mubr.bf16.gmra.mxu0 %v754_v53 }
 0x1d1   : > { %v708_v59 = vadd.f32 %v1458_v25, %v707_v58  ;;  %1714 = vmatpush3.bf16.msra.mxu0 %v1838_v20  ;;  %v746_v60 = vmax.f32 %v716_v56, 0.0 }
 0x1d2   : > { %v1675_v61 = vpop.f32.mrf.mxu1  ;;  %1715 = vmatprep.subr.bf16.mxu0 %v1839_v21 }
 0x1d3   : > { %v744_v63 = vmax.f32 %v708_v59, 0.0  ;;  %v756_v3 = vpack.c.bf16 %v746_v60, %v745_v0  ;;  %v729_v7 = vadd.f32 %v1675_v61, %v1458_v25 }
 0x1d4   : > { %v720_v1 = vpop.f32.mrf.mxu1 }
 0x1d5   : > { %v755_v2 = vpack.c.bf16 %v744_v63, %v743_v62  ;;  %1716 = vmatpush3.bf16.msra.mxu0 %v1839_v21  ;;  %v721_v5 = vadd.f32 %v1458_v25, %v720_v1  ;;  %v749_v13 = vmax.f32 %v729_v7, 0.0  ;;  %v1467_v21 = vld [vmem:[%s2375_s6] ss:$0 sm:$0xff] }
 0x1d6   : > { %v1676_v4 = vpop.f32.mrf.mxu1  ;;  %1717 = vmatprep.subr.bf16.mxu0 %v2198_v22 }
 0x1d7   : > { %v732_v6 = vadd.f32 %v1676_v4, %v1458_v25  ;;  %1701 = vmatprep.mubr.bf16.mxu0 %v755_v2  ;;  %v747_v11 = vmax.f32 %v721_v5, 0.0 }
 0x1d8   : > { %v723_v8 = vpop.f32.mrf.mxu1  ;;  %1702 = vmatmul.mubr.bf16.gmra.mxu0 %v756_v3 }
 0x1d9   : > { %v724_v9 = vadd.f32 %v1458_v25, %v723_v8  ;;  %1718 = vmatpush3.bf16.msra.mxu0 %v2198_v22  ;;  %v750_v10 = vmax.f32 %v732_v6, 0.0 }
 0x1da   : > { %1719 = vmatprep.subr.bf16.mxu0 %v1841_v16 }
 0x1db   : > { %v748_v12 = vmax.f32 %v724_v9, 0.0  ;;  %v758_v15 = vpack.c.bf16 %v750_v10, %v749_v13 }
 0x1dd   : > { %v757_v14 = vpack.c.bf16 %v748_v12, %v747_v11  ;;  %1720 = vmatpush3.bf16.msra.mxu0 %v1841_v16  ;;  %v1476_v12 = vld [vmem:[%s2377_s8] ss:$0 sm:$0xff] }
 0x1de   : > { %1721 = vmatprep.subr.bf16.mxu0 %v1842_v17 }
 0x1df   : > { %1705 = vmatprep.mubr.bf16.mxu0 %v757_v14 }
 0x1e0   : > { %1706 = vmatmul.mubr.bf16.gmra.mxu0 %v758_v15 }
 0x1e1   : > { %1722 = vmatpush3.bf16.msra.mxu0 %v1842_v17 }
 0x1e2   : > { %1723 = vmatprep.subr.bf16.mxu0 %v1843_v18 }
 0x1e5   : > { %1724 = vmatpush3.bf16.msra.mxu0 %v1843_v18 }
 0x288   : > { %v1695_v19 = vpop.f32.mrf.mxu0 }
 0x289   : > { %v873_v25 = vadd.f32 %v1695_v19, %v1467_v21 }
 0x28a   : > { %v864_v20 = vpop.f32.mrf.mxu0 }
 0x28b   : > { %v865_v23 = vadd.f32 %v1467_v21, %v864_v20  ;;  %v929_v32 = vmax.f32 %v873_v25, 0.0 }
 0x28c   : > { %v1696_v22 = vpop.f32.mrf.mxu0 }
 0x28d   : > { %v876_v24 = vadd.f32 %v1696_v22, %v1467_v21  ;;  %v927_v30 = vmax.f32 %v865_v23, 0.0 }
 0x28e   : > { %v867_v26 = vpop.f32.mrf.mxu0 }
 0x28f   : > { %v868_v27 = vadd.f32 %v1467_v21, %v867_v26  ;;  %v930_v28 = vmax.f32 %v876_v24, 0.0 }
 0x290   : > { %v1699_v29 = vpop.f32.mrf.mxu0 }
 0x291   : > { %v928_v31 = vmax.f32 %v868_v27, 0.0  ;;  %v944_v35 = vpack.c.bf16 %v930_v28, %v929_v32  ;;  %v889_v39 = vadd.f32 %v1699_v29, %v1467_v21 }
 0x292   : > { %v880_v33 = vpop.f32.mrf.mxu0 }
 0x293   : > { %v943_v34 = vpack.c.bf16 %v928_v31, %v927_v30  ;;  %v881_v37 = vadd.f32 %v1467_v21, %v880_v33  ;;  %v933_v46 = vmax.f32 %v889_v39, 0.0 }
 0x294   : > { %v1700_v36 = vpop.f32.mrf.mxu0 }
 0x295   : > { %v892_v38 = vadd.f32 %v1700_v36, %v1467_v21  ;;  %1725 = vmatprep.mubr.bf16.mxu0 %v943_v34  ;;  %v931_v44 = vmax.f32 %v881_v37, 0.0 }
 0x296   : > { %v883_v40 = vpop.f32.mrf.mxu0  ;;  %1726 = vmatmul.mubr.bf16.vlgmr.msra.gmra.mxu0 %v944_v35 }
 0x297   : > { %v884_v41 = vadd.f32 %v1467_v21, %v883_v40  ;;  %v934_v42 = vmax.f32 %v892_v38, 0.0 }
 0x298   : > { %v1703_v43 = vpop.f32.mrf.mxu0 }
 0x299   : > { %v932_v45 = vmax.f32 %v884_v41, 0.0  ;;  %v946_v49 = vpack.c.bf16 %v934_v42, %v933_v46  ;;  %v905_v53 = vadd.f32 %v1703_v43, %v1467_v21 }
 0x29a   : > { %v896_v47 = vpop.f32.mrf.mxu0 }
 0x29b   : > { %v945_v48 = vpack.c.bf16 %v932_v45, %v931_v44  ;;  %v897_v51 = vadd.f32 %v1467_v21, %v896_v47  ;;  %v937_v60 = vmax.f32 %v905_v53, 0.0 }
 0x29c   : > { %v1704_v50 = vpop.f32.mrf.mxu0 }
 0x29d   : > { %v908_v52 = vadd.f32 %v1704_v50, %v1467_v21  ;;  %1729 = vmatprep.mubr.bf16.mxu1 %v945_v48  ;;  %v935_v58 = vmax.f32 %v897_v51, 0.0 }
 0x29e   : > { %v899_v54 = vpop.f32.mrf.mxu0  ;;  %1730 = vmatmul.mubr.bf16.vlgmr.msra.gmra.mxu1 %v946_v49 }
 0x29f   : > { %v900_v55 = vadd.f32 %v1467_v21, %v899_v54  ;;  %v938_v56 = vmax.f32 %v908_v52, 0.0 }
 0x2a0   : > { %v1707_v57 = vpop.f32.mrf.mxu0 }
 0x2a1   : > { %v936_v59 = vmax.f32 %v900_v55, 0.0  ;;  %v948_v63 = vpack.c.bf16 %v938_v56, %v937_v60  ;;  %v921_v3 = vadd.f32 %v1707_v57, %v1467_v21 }
 0x2a2   : > { %v912_v61 = vpop.f32.mrf.mxu0 }
 0x2a3   : > { %v947_v62 = vpack.c.bf16 %v936_v59, %v935_v58  ;;  %v913_v1 = vadd.f32 %v1467_v21, %v912_v61  ;;  %v941_v9 = vmax.f32 %v921_v3, 0.0 }
 0x2a4   : > { %v1708_v0 = vpop.f32.mrf.mxu0 }
 0x2a5   : > { %v924_v2 = vadd.f32 %v1708_v0, %v1467_v21  ;;  %1733 = vmatprep.mubr.bf16.mxu1 %v947_v62  ;;  %v939_v7 = vmax.f32 %v913_v1, 0.0 }
 0x2a6   : > { %v915_v4 = vpop.f32.mrf.mxu0  ;;  %1734 = vmatmul.mubr.bf16.gmra.mxu1 %v948_v63 }
 0x2a7   : > { %v916_v5 = vadd.f32 %v1467_v21, %v915_v4  ;;  %v942_v6 = vmax.f32 %v924_v2, 0.0 }
 0x2a9   : > { %v940_v8 = vmax.f32 %v916_v5, 0.0  ;;  %v950_v11 = vpack.c.bf16 %v942_v6, %v941_v9 }
 0x2ab   : > { %v949_v10 = vpack.c.bf16 %v940_v8, %v939_v7 }
 0x2ad   : > { %1737 = vmatprep.mubr.bf16.mxu1 %v949_v10 }
 0x2ae   : > { %1738 = vmatmul.mubr.bf16.gmra.mxu1 %v950_v11 }
 0x356   : > { %v1727_v13 = vpop.f32.mrf.mxu0 }
 0x357   : > { %v1065_v14 = vadd.f32 %v1727_v13, %v1476_v12 }
 0x358   : > { %v1056_v15 = vpop.f32.mrf.mxu0 }
 0x359   : > { %v1057_v16 = vadd.f32 %v1476_v12, %v1056_v15  ;;  %1123 = vmax.xlane.f32.xlu1 %v1065_v14 }
 0x35a   : > { %v1728_v17 = vpop.f32.mrf.mxu0 }
 0x35b   : > { %v1068_v18 = vadd.f32 %v1728_v17, %v1476_v12  ;;  %1119 = vmax.xlane.f32.xlu0 %v1057_v16 }
 0x35c   : > { %v1059_v19 = vpop.f32.mrf.mxu0 }
 0x35d   : > { %v1060_v20 = vadd.f32 %v1476_v12, %v1059_v19  ;;  %1125 = vmax.xlane.f32.xlu1 %v1068_v18 }
 0x35e   : > { %v1731_v21 = vpop.f32.mrf.mxu1 }
 0x35f   : > { %1121 = vmax.xlane.f32.xlu0 %v1060_v20  ;;  %v1081_v23 = vadd.f32 %v1731_v21, %v1476_v12 }
 0x360   : > { %v1072_v22 = vpop.f32.mrf.mxu1 }
 0x361   : > { %v1073_v27 = vadd.f32 %v1476_v12, %v1072_v22 }
 0x362   : > { %v1732_v24 = vpop.f32.mrf.mxu1 }
 0x363   : > { %v1084_v25 = vadd.f32 %v1732_v24, %v1476_v12  ;;  %1131 = vmax.xlane.f32.xlu0 %v1081_v23 }
 0x364   : > { %v1075_v26 = vpop.f32.mrf.mxu1 }
 0x365   : > { %1133 = vmax.xlane.f32.xlu1 %v1084_v25  ;;  %v1076_v29 = vadd.f32 %v1476_v12, %v1075_v26 }
 0x366   : > { %v1735_v28 = vpop.f32.mrf.mxu1 }
 0x367   : > { %1127 = vmax.xlane.f32.xlu0 %v1073_v27  ;;  %v1097_v31 = vadd.f32 %v1735_v28, %v1476_v12 }
 0x368   : > { %v1088_v30 = vpop.f32.mrf.mxu1 }
 0x369   : > { %1129 = vmax.xlane.f32.xlu1 %v1076_v29  ;;  %v2215_v35 = vadd.f32 %v1476_v12, %v1088_v30 }
 0x36a   : > { %v1736_v32 = vpop.f32.mrf.mxu1 }
 0x36b   : > { %v2213_v33 = vadd.f32 %v1736_v32, %v1476_v12  ;;  %1139 = vmax.xlane.f32.xlu0 %v1097_v31 }
 0x36c   : > { %v1091_v34 = vpop.f32.mrf.mxu1 }
 0x36d   : > { %1141 = vmax.xlane.f32.xlu1 %v2213_v33  ;;  %v2218_v37 = vadd.f32 %v1476_v12, %v1091_v34 }
 0x36e   : > { %v1739_v36 = vpop.f32.mrf.mxu1 }
 0x36f   : > { %1135 = vmax.xlane.f32.xlu0 %v2215_v35  ;;  %v2225_v42 = vadd.f32 %v1739_v36, %v1476_v12 }
 0x370   : > { %v1104_v38 = vpop.f32.mrf.mxu1 }
 0x371   : > { %v2221_v39 = vadd.f32 %v1476_v12, %v1104_v38  ;;  %1137 = vmax.xlane.f32.xlu1 %v2218_v37 }
 0x372   : > { %v1740_v40 = vpop.f32.mrf.mxu1 }
 0x373   : > { %1143 = vmax.xlane.f32.xlu0 %v2221_v39  ;;  %v2231_v44 = vadd.f32 %v1740_v40, %v1476_v12 }
 0x374   : > { %v1107_v41 = vpop.f32.mrf.mxu1 }
 0x375   : > { %v2227_v43 = vadd.f32 %v1476_v12, %v1107_v41 }
 0x377   : > { %1145 = vmax.xlane.f32.xlu1 %v2227_v43  ;;  %1147 = vmax.xlane.f32.xlu0 %v2225_v42 }
 0x37b   : > { %1149 = vmax.xlane.f32.xlu1 %v2231_v44 }
 0x3e2   : > { %v1124_v45 = vpop.xlane.xlu1 %1123 }
 0x3e3   : > { %v1153_v46 = vsub.f32 %v1065_v14, %v1124_v45 }
 0x3e4   : > { %v1120_v47 = vpop.xlane.xlu0 %1119 }
 0x3e5   : > { %v1171_v48 = vmul.f32 1.442695, %v1153_v46  ;;  %v1151_v49 = vsub.f32 %v1057_v16, %v1120_v47 }
 0x3e6   : > { %v1126_v50 = vpop.xlane.xlu1 %1125 }
 0x3e7   : > { %1844 = vpow2.f32 %v1171_v48  ;;  %v1167_v51 = vmul.f32 1.442695, %v1151_v49  ;;  %v1154_v52 = vsub.f32 %v1068_v18, %v1126_v50 }
 0x3e8   : > { %v1122_v53 = vpop.xlane.xlu0 %1121 }
 0x3e9   : > { %v1173_v54 = vmul.f32 1.442695, %v1154_v52  ;;  %v1152_v55 = vsub.f32 %v1060_v20, %v1122_v53  ;;  %1846 = vpow2.f32 %v1167_v51 }
 0x3eb   : > { %1848 = vpow2.f32 %v1173_v54  ;;  %v1169_v56 = vmul.f32 1.442695, %v1152_v55 }
 0x3ec   : > { %v1132_v57 = vpop.xlane.xlu0 %1131 }
 0x3ed   : > { %v1157_v58 = vsub.f32 %v1081_v23, %v1132_v57  ;;  %1850 = vpow2.f32 %v1169_v56 }
 0x3ee   : > { %v1134_v59 = vpop.xlane.xlu1 %1133 }
 0x3ef   : > { %v1179_v60 = vmul.f32 1.442695, %v1157_v58  ;;  %v1158_v61 = vsub.f32 %v1084_v25, %v1134_v59 }
 0x3f0   : > { %v1128_v62 = vpop.xlane.xlu0 %1127 }
 0x3f1   : > { %1852 = vpow2.f32 %v1179_v60  ;;  %v1181_v63 = vmul.f32 1.442695, %v1158_v61  ;;  %v1155_v0 = vsub.f32 %v1073_v27, %v1128_v62 }
 0x3f2   : > { %v1130_v1 = vpop.xlane.xlu1 %1129 }
 0x3f3   : > { %1854 = vpow2.f32 %v1181_v63  ;;  %v1175_v2 = vmul.f32 1.442695, %v1155_v0  ;;  %v1156_v3 = vsub.f32 %v1076_v29, %v1130_v1 }
 0x3f4   : > { %v2234_v4 = vpop.eup %1844  ;;  %v1140_v5 = vpop.xlane.xlu0 %1139 }
 0x3f5   : > { %1856 = vpow2.f32 %v1175_v2  ;;  %v1177_v6 = vmul.f32 1.442695, %v1156_v3  ;;  %v1161_v7 = vsub.f32 %v1097_v31, %v1140_v5  ;;  %1203 = vadd.xlane.f32.xlu0 %v2234_v4 }
 0x3f6   : > { %v1142_v8 = vpop.xlane.xlu1 %1141  ;;  %v2237_v9 = vpop.eup %1846 }
 0x3f7   : > { %1858 = vpow2.f32 %v1177_v6  ;;  %v1187_v10 = vmul.f32 1.442695, %v1161_v7  ;;  %v1162_v11 = vsub.f32 %v2213_v33, %v1142_v8 }
 0x3f8   : > { %v2240_v12 = vpop.eup %1848  ;;  %v1136_v13 = vpop.xlane.xlu0 %1135 }
 0x3f9   : > { %1860 = vpow2.f32 %v1187_v10  ;;  %v1189_v14 = vmul.f32 1.442695, %v1162_v11  ;;  %v1159_v15 = vsub.f32 %v2215_v35, %v1136_v13  ;;  %1205 = vadd.xlane.f32.xlu1 %v2240_v12  ;;  %1199 = vadd.xlane.f32.xlu0 %v2237_v9 }
 0x3fa   : > { %v1138_v16 = vpop.xlane.xlu1 %1137  ;;  %v2246_v19 = vpop.eup %1850 }
 0x3fb   : > { %1862 = vpow2.f32 %v1189_v14  ;;  %v1183_v17 = vmul.f32 1.442695, %v1159_v15  ;;  %v1160_v18 = vsub.f32 %v2218_v37, %v1138_v16 }
 0x3fc   : > { %v1144_v20 = vpop.xlane.xlu0 %1143 }
 0x3fd   : > { %1864 = vpow2.f32 %v1183_v17  ;;  %v1185_v21 = vmul.f32 1.442695, %v1160_v18  ;;  %v1163_v22 = vsub.f32 %v2221_v39, %v1144_v20  ;;  %1201 = vadd.xlane.f32.xlu1 %v2246_v19 }
 0x3fe   : > { %v2250_v23 = vpop.eup %1852 }
 0x3ff   : > { %1866 = vpow2.f32 %v1185_v21  ;;  %v1191_v24 = vmul.f32 1.442695, %v1163_v22  ;;  %1211 = vadd.xlane.f32.xlu0 %v2250_v23 }
 0x400   : > { %v2253_v25 = vpop.eup %1854  ;;  %v1146_v26 = vpop.xlane.xlu1 %1145 }
 0x401   : > { %v1148_v27 = vpop.xlane.xlu0 %1147  ;;  %1868 = vpow2.f32 %v1191_v24  ;;  %v1164_v28 = vsub.f32 %v2227_v43, %v1146_v26  ;;  %1213 = vadd.xlane.f32.xlu1 %v2253_v25 }
 0x402   : > { %v1165_v29 = vsub.f32 %v2225_v42, %v1148_v27  ;;  %v2258_v30 = vpop.eup %1856 }
 0x403   : > { %v1193_v31 = vmul.f32 1.442695, %v1164_v28  ;;  %1207 = vadd.xlane.f32.xlu0 %v2258_v30 }
 0x404   : > { %v1195_v32 = vmul.f32 1.442695, %v1165_v29  ;;  %v2261_v33 = vpop.eup %1858  ;;  %v1150_v34 = vpop.xlane.xlu1 %1149 }
 0x405   : > { %1870 = vpow2.f32 %v1193_v31  ;;  %v1166_v35 = vsub.f32 %v2231_v44, %v1150_v34  ;;  %1209 = vadd.xlane.f32.xlu1 %v2261_v33 }
 0x406   : > { %v2265_v36 = vpop.eup %1860  ;;  %1872 = vpow2.f32 %v1195_v32 }
 0x407   : > { %v1197_v37 = vmul.f32 1.442695, %v1166_v35  ;;  %1219 = vadd.xlane.f32.xlu0 %v2265_v36 }
 0x408   : > { %v2268_v38 = vpop.eup %1862 }
 0x409   : > { %1874 = vpow2.f32 %v1197_v37  ;;  %1221 = vadd.xlane.f32.xlu1 %v2268_v38 }
 0x40a   : > { %v2271_v39 = vpop.eup %1864 }
 0x40b   : > { %1215 = vadd.xlane.f32.xlu0 %v2271_v39 }
 0x40c   : > { %v2274_v40 = vpop.eup %1866 }
 0x40d   : > { %1217 = vadd.xlane.f32.xlu1 %v2274_v40 }
 0x40e   : > { %v2277_v41 = vpop.eup %1868 }
 0x40f   : > { %1223 = vadd.xlane.f32.xlu0 %v2277_v41 }
 0x412   : > { %v2280_v42 = vpop.eup %1870 }
 0x413   : > { %v2282_v43 = vpop.eup %1872  ;;  %1225 = vadd.xlane.f32.xlu1 %v2280_v42 }
 0x414   : > { %1227 = vadd.xlane.f32.xlu0 %v2282_v43 }
 0x416   : > { %v2286_v44 = vpop.eup %1874 }
 0x417   : > { %1229 = vadd.xlane.f32.xlu1 %v2286_v44 }
 0x47e   : > { %v1204_v45 = vpop.xlane.xlu0 %1203 }
 0x47f   : > { %1876 = vrcp.f32 %v1204_v45 }
 0x482   : > { %v1206_v46 = vpop.xlane.xlu1 %1205  ;;  %v1200_v47 = vpop.xlane.xlu0 %1199 }
 0x483   : > { %1878 = vrcp.f32 %v1206_v46 }
 0x484   : > { %1880 = vrcp.f32 %v1200_v47 }
 0x486   : > { %v1202_v48 = vpop.xlane.xlu1 %1201 }
 0x487   : > { %1882 = vrcp.f32 %v1202_v48 }
 0x488   : > { %v1212_v49 = vpop.xlane.xlu0 %1211 }
 0x489   : > { %1884 = vrcp.f32 %v1212_v49 }
 0x48a   : > { %v1214_v50 = vpop.xlane.xlu1 %1213 }
 0x48b   : > { %1886 = vrcp.f32 %v1214_v50 }
 0x48c   : > { %v1208_v51 = vpop.xlane.xlu0 %1207  ;;  %v1877_v52 = vpop.eup %1876 }
 0x48d   : > { %1888 = vrcp.f32 %v1208_v51  ;;  %v1236_v56 = vmul.f32 %v1877_v52, %v2234_v4 }
 0x48e   : > { %v1210_v53 = vpop.xlane.xlu1 %1209 }
 0x48f   : > { %1890 = vrcp.f32 %v1210_v53 }
 0x490   : > { %v1879_v54 = vpop.eup %1878  ;;  %v1220_v55 = vpop.xlane.xlu0 %1219 }
 0x491   : > { %v1238_v57 = vmul.f32 %v1879_v54, %v2240_v12  ;;  %1892 = vrcp.f32 %v1220_v55  ;;  %v1881_v58 = vpop.eup %1880 }
 0x492   : > { %v1222_v59 = vpop.xlane.xlu1 %1221  ;;  %v1232_v63 = vmul.f32 %v1881_v58, %v2237_v9 }
 0x493   : > { %v1531_v60 = vpack.c.bf16 %v1238_v57, %v1236_v56  ;;  %1894 = vrcp.f32 %v1222_v59 }
 0x494   : > { %v1883_v61 = vpop.eup %1882  ;;  %v1216_v62 = vpop.xlane.xlu0 %1215 }
 0x495   : > { %1563 = vst [vmem:[%s2294_s14 + $0x8] sm:$0xff] %v1531_v60   ;;  %v1234_v0 = vmul.f32 %v1883_v61, %v2246_v19  ;;  %1896 = vrcp.f32 %v1216_v62 }
 0x496   : > { %v1885_v1 = vpop.eup %1884  ;;  %v1218_v2 = vpop.xlane.xlu1 %1217 }
 0x497   : > { %v1526_v3 = vpack.c.bf16 %v1234_v0, %v1232_v63  ;;  %1898 = vrcp.f32 %v1218_v2  ;;  %v1244_v6 = vmul.f32 %v1885_v1, %v2250_v23 }
 0x498   : > { %v1887_v4 = vpop.eup %1886  ;;  %v1224_v5 = vpop.xlane.xlu0 %1223 }
 0x499   : > { %1527 = vst [vmem:[%s2294_s14] sm:$0xff] %v1526_v3   ;;  %v1246_v7 = vmul.f32 %v1887_v4, %v2253_v25  ;;  %1900 = vrcp.f32 %v1224_v5 }
 0x49a   : > { %v1889_v8 = vpop.eup %1888 }
 0x49b   : > { %v1541_v10 = vpack.c.bf16 %v1246_v7, %v1244_v6  ;;  %v1240_v12 = vmul.f32 %v1889_v8, %v2258_v30 }
 0x49c   : > { %v1891_v9 = vpop.eup %1890  ;;  %v1226_v11 = vpop.xlane.xlu1 %1225 }
 0x49d   : > { %1565 = vst [vmem:[%s2294_s14 + $0x18] sm:$0xff] %v1541_v10   ;;  %v1242_v13 = vmul.f32 %v1891_v9, %v2261_v33  ;;  %1902 = vrcp.f32 %v1226_v11  ;;  %v1228_v14 = vpop.xlane.xlu0 %1227 }
 0x49e   : > { %v1893_v15 = vpop.eup %1892  ;;  %1904 = vrcp.f32 %v1228_v14 }
 0x49f   : > { %v1536_v16 = vpack.c.bf16 %v1242_v13, %v1240_v12  ;;  %v1252_v19 = vmul.f32 %v1893_v15, %v2265_v36 }
 0x4a0   : > { %v1895_v17 = vpop.eup %1894  ;;  %v1230_v18 = vpop.xlane.xlu1 %1229 }
 0x4a1   : > { %1564 = vst [vmem:[%s2294_s14 + $0x10] sm:$0xff] %v1536_v16   ;;  %v1254_v20 = vmul.f32 %v1895_v17, %v2268_v38  ;;  %1906 = vrcp.f32 %v1230_v18 }
 0x4a2   : > { %v1897_v21 = vpop.eup %1896 }
 0x4a3   : > { %v1551_v22 = vpack.c.bf16 %v1254_v20, %v1252_v19  ;;  %v1248_v24 = vmul.f32 %v1897_v21, %v2271_v39 }
 0x4a4   : > { %v1899_v23 = vpop.eup %1898 }
 0x4a5   : > { %1567 = vst [vmem:[%s2294_s14 + $0x28] sm:$0xff] %v1551_v22   ;;  %v1250_v25 = vmul.f32 %v1899_v23, %v2274_v40 }
 0x4a6   : > { %v1901_v27 = vpop.eup %1900 }
 0x4a7   : > { %v1546_v26 = vpack.c.bf16 %v1250_v25, %v1248_v24  ;;  %v1256_v29 = vmul.f32 %v1901_v27, %v2277_v41 }
 0x4a9   : > { %1566 = vst [vmem:[%s2294_s14 + $0x20] sm:$0xff] %v1546_v26  }
 0x4aa   : > { %v1903_v28 = vpop.eup %1902 }
 0x4ab   : > { %v1258_v30 = vmul.f32 %v1903_v28, %v2280_v42  ;;  %v1905_v31 = vpop.eup %1904 }
 0x4ac   : > { %v1260_v34 = vmul.f32 %v1905_v31, %v2282_v43 }
 0x4ad   : > { %v1556_v32 = vpack.c.bf16 %v1258_v30, %v1256_v29 }
 0x4ae   : > { %v1907_v33 = vpop.eup %1906 }
 0x4af   : > { %1568 = vst [vmem:[%s2294_s14 + $0x30] sm:$0xff] %v1556_v32   ;;  %v1262_v35 = vmul.f32 %v1907_v33, %v2286_v44 }
 0x4b1   : > { %v1561_v36 = vpack.c.bf16 %v1262_v35, %v1260_v34 }
 0x4b3   : > { %1569 = vst [vmem:[%s2294_s14 + $0x38] sm:$0xff] %v1561_v36  }
 0x4b4   : > { %1947 = shalt.err (!%p1944_p0)
}
 0x4b5   : > { %s1948_s22 = scalar_lea.hbm %s2322_s21, 1024  ;;  %s1952_s16 = scalar_lea.hbm %s2378_s9, 2048 }
 0x4b6   : > { %p1949_p1 = scmp.ne.s32.totalorder %s2322_s21, %s1948_s22  ;;  %p1953_p4 = scmp.lt.s32.totalorder %s2322_s21, %s2378_s9 }
 0x4b7   : > { %p1954_p7 = scmp.lt.s32.totalorder %s1952_s16, %s1948_s22 }
 0x4b8   : > { %p1950_p2 = pnand %p1949_p1, %p2094_p5 }
 0x4b9   : > { %p1955_p8 = por %p1954_p7, %p1953_p4 }
 0x4ba   : > { %p1951_p3 = pneg %p1950_p2 }
 0x4bc   : > { %p1956_p6 = pnand %p1955_p8, %p1951_p3 }
 0x4be   : > { %1959 = shalt.err (!%p1956_p6)
}
 0x4bf   : > { %s2004_s25 = smov 64   ;;  %s2005_s26 = smov 4  }
 0x4c0   : > { %1761 = dma.vmem_to_hbm [thread:$0]  (%p2094_p5), %s2324_s17, 1024, %s2322_s21, %s2329_s13, %s2004_s25, %s2004_s25, %s2005_s26  }
 0x4c1 PF: > { %p1773_p9 = scmp.ge.s32.totalorder %s1998_s12, 2  ;;  %s1372_s27 = sand.u32 1, %s1986_s30  }
 0x4c2   : > { %p2382_p10 = scmp.ne.s32.totalorder %s2380_s20, 0  ;;  %s1373_s28 = scalar_lea.sflag [#allocation4], %s1372_s27 }
 0x4c4   : > { %p1768_p11 = pnand %p1773_p9, %p2382_p10 }
 0x4c6   : > { %p1769_p12 = pneg %p1768_p11 }
 0x4c8   : > { %1981 = dma.done.wait (%p1769_p12), %s1373_s28, 1024  }
 0x4c9   : > { %1983 = vsyncadd (%p1769_p12), %s1373_s28, 4294966272  ;;  %p20_p13 = scmp.ge.s32.totalorder %s2081_s15, 4   ;;  %s2383_s30 = smov %s1990_s10 }
 0x4ca   : > { %s2384_s10 = smov %s1994_s11  ;;  %s2385_s11 = smov %s2092_s18 }
 0x4cb   : > { %s2386_s12 = smov %s2081_s15  ;;  %22 = sbr.rel (!%p20_p13) target bundleno = 4 (0x4), region = 96 }
 0x4d0   :  { %1378 = vsyncpa [#allocation3], 1 }
 0x4d1   :  { %1380 = vsyncpa [#allocation3 + $0x1], 1 }
 0x4d2   :  { %1381 = vsyncpa [#allocation4], 1 }
 0x4d3   :  { %1383 = vsyncpa [#allocation4 + $0x1], 1 }

</bundles_post_ra>
